<compile_context>
chip_gen: v7x
topology: tpu7x:2x2x1
jax: 0.10.0
libtpu: 0.0.40
codegen_flags: <defaults>
</compile_context>

<pallas_src>
import jax
import jax.numpy as jnp
from jax.experimental import pallas as pl
from jax.experimental.pallas import tpu as pltpu


def _linear_small_kernel(w_ref, b_ref, x_ref, o_ref):
    # w_ref: (2,) f32 SMEM, b_ref: (1,) f32 SMEM
    # x_ref: (B, 2) VMEM, o_ref: (B, 1) f32 VMEM  (whole arrays, no grid)
    x = x_ref[...].astype(jnp.float32)
    o_ref[...] = x[:, 0:1] * w_ref[0] + x[:, 1:2] * w_ref[1] + b_ref[0]


def _linear_tiled_kernel(w_ref, b_ref, x_ref, o_ref):
    # w_ref: (2,) f32 SMEM, b_ref: (1,) f32 SMEM
    # x_ref: (2, tr, 128) VMEM (feature-major, batch folded sublane x lane)
    # o_ref: (tr, 128) f32 VMEM
    # Pure VPU: 2 muls + 2 adds per dense (tr,128) tile. No MXU, no transpose.
    x0 = x_ref[0].astype(jnp.float32)
    x1 = x_ref[1].astype(jnp.float32)
    o_ref[...] = x0 * w_ref[0] + x1 * w_ref[1] + b_ref[0]


def linear_forward(x, weight, bias, *, block_rows=2048, small_batch=1024):
    """Pallas equivalent of nn.Linear(2, 1).forward(x). x: (B, 2)."""
    B, in_features = x.shape
    assert in_features == 2
    assert block_rows >= 8 and block_rows % 8 == 0, "block_rows must be a multiple of 8"

    w_flat = weight.reshape(-1).astype(jnp.float32)   # (2,) SMEM scalars
    b_flat = bias.reshape(-1).astype(jnp.float32)     # (1,) SMEM scalar

    if B <= small_batch:
        # Minimal-overhead path: single whole-array block, no grid, no wrapper ops.
        return pl.pallas_call(
            _linear_small_kernel,
            out_shape=jax.ShapeDtypeStruct((B, 1), jnp.float32),
            in_specs=[
                pl.BlockSpec(memory_space=pltpu.MemorySpace.SMEM),   # weight scalars
                pl.BlockSpec(memory_space=pltpu.MemorySpace.SMEM),   # bias scalar
                pl.BlockSpec(memory_space=pltpu.MemorySpace.VMEM),   # x (B, 2)
            ],
            out_specs=pl.BlockSpec(memory_space=pltpu.MemorySpace.VMEM),
        )(w_flat, b_flat, x)

    # ---- Large-B path: sublane + lane dense tiles ---------------------------
    # Feature-major view of x. (One extra HBM pass; see TODO(synk) above.)
    x_t = x.T                                        # (2, B)
    # Pad batch to a multiple of 128*8 so rows is a multiple of 8 (free-ish).
    b_pad = ((B + 1023) // 1024) * 1024
    if b_pad != B:
        x_t = jnp.pad(x_t, ((0, 0), (0, b_pad - B)))
    rows = b_pad // 128
    x3 = x_t.reshape(2, rows, 128)                   # row-major reshape, no copy

    # Tile rows: big enough to amortize per-step overhead, multiple of 8,
    # and >= 2 grid blocks so v7x's two TensorCores both get work.
    tr = min(block_rows, rows)
    if rows > 8:
        half_rows = ((pl.cdiv(rows, 2) + 7) // 8) * 8
        tr = min(tr, half_rows)
    num_blocks = pl.cdiv(rows, tr)

    out3 = pl.pallas_call(
        _linear_tiled_kernel,
        out_shape=jax.ShapeDtypeStruct((rows, 128), jnp.float32),
        grid_spec=pltpu.PrefetchScalarGridSpec(
            num_scalar_prefetch=0,
            grid=(num_blocks,),
            in_specs=[
                pl.BlockSpec(memory_space=pltpu.MemorySpace.SMEM),      # weight
                pl.BlockSpec(memory_space=pltpu.MemorySpace.SMEM),      # bias
                pl.BlockSpec((2, tr, 128), lambda i: (0, i, 0)),        # x tiles
            ],
            out_specs=pl.BlockSpec((tr, 128), lambda i: (i, 0)),
        ),
        compiler_params=pltpu.CompilerParams(
            dimension_semantics=("parallel",),
        ),
    )(w_flat, b_flat, x3)

    # (rows, 128) -> (b_pad, 1) is a free reshape; slice off padded lanes.
    out = out3.reshape(b_pad, 1)
    return out[:B] if b_pad != B else out


if __name__ == "__main__":
    key = jax.random.PRNGKey(0)
    kx, kw, kb, kx2 = jax.random.split(key, 4)

    IN, OUT = 2, 1
    # PyTorch-style uniform(-1/sqrt(in), 1/sqrt(in)) init, deterministic.
    bound = 1.0 / jnp.sqrt(jnp.float32(IN))
    weight = jax.random.uniform(kw, (OUT, IN), jnp.float32, -bound, bound)
    bias = jax.random.uniform(kb, (OUT,), jnp.float32, -bound, bound)

    # 1) Small-batch path (the module's literal use case, B=8).
    B_small = 8
    x_small = jax.random.normal(kx, (B_small, IN), dtype=jnp.float32)
    y_small = linear_forward(x_small, weight, bias)
    jax.block_until_ready(y_small)
    ref_small = x_small @ weight.T + bias
    assert y_small.shape == (B_small, OUT)
    assert jnp.allclose(y_small, ref_small, atol=1e-5), "small-path mismatch"

    # 2) Tiled large-batch path (sublane+lane-dense (tr,128) tiles).
    B_big = 4096
    x_big = jax.random.normal(kx2, (B_big, IN), dtype=jnp.float32)
    y_big = linear_forward(x_big, weight, bias)
    jax.block_until_ready(y_big)
    ref_big = x_big @ weight.T + bias
    assert y_big.shape == (B_big, OUT)
    assert jnp.allclose(y_big, ref_big, atol=1e-5), "tiled-path mismatch"

    print("KERNEL_OK")
</pallas_src>

<mosaic_0001>
module attributes {stable_mosaic.version = 11 : i64} {
  func.func @_linear_small_kernel(%arg0: memref<2xf32, #tpu.memory_space<smem>>, %arg1: memref<1xf32, #tpu.memory_space<smem>>, %arg2: memref<8x2xf32, #tpu.memory_space<vmem>>, %arg3: memref<8x1xf32, #tpu.memory_space<vmem>>) attributes {dimension_semantics = [], scalar_prefetch = 0 : i64, scratch_operands = 0 : i64, tpu.core_type = #tpu.core_type<tc>} {
    %c0 = arith.constant 0 : index
    %c0_0 = arith.constant 0 : index
    %0 = vector.load %arg2[%c0, %c0_0] : memref<8x2xf32, #tpu.memory_space<vmem>>, vector<8x2xf32>
    %1 = vector.extract_strided_slice %0 {offsets = [0, 0], sizes = [8, 1], strides = [1, 1]} : vector<8x2xf32> to vector<8x1xf32>
    %c0_1 = arith.constant 0 : index
    %2 = memref.load %arg0[%c0_1] : memref<2xf32, #tpu.memory_space<smem>>
    %3 = vector.broadcast %2 : f32 to vector<8x1xf32>
    %4 = arith.mulf %1, %3 : vector<8x1xf32>
    %5 = vector.extract_strided_slice %0 {offsets = [0, 1], sizes = [8, 1], strides = [1, 1]} : vector<8x2xf32> to vector<8x1xf32>
    %c1 = arith.constant 1 : index
    %6 = memref.load %arg0[%c1] : memref<2xf32, #tpu.memory_space<smem>>
    %7 = vector.broadcast %6 : f32 to vector<8x1xf32>
    %8 = arith.mulf %5, %7 : vector<8x1xf32>
    %9 = arith.addf %4, %8 : vector<8x1xf32>
    %c0_2 = arith.constant 0 : index
    %10 = memref.load %arg1[%c0_2] : memref<1xf32, #tpu.memory_space<smem>>
    %11 = vector.broadcast %10 : f32 to vector<8x1xf32>
    %12 = arith.addf %9, %11 : vector<8x1xf32>
    %c0_3 = arith.constant 0 : index
    %c0_4 = arith.constant 0 : index
    %13 = vector.load %arg3[%c0_3, %c0_4] : memref<8x1xf32, #tpu.memory_space<vmem>>, vector<8x1xf32>
    tpu.vector_store %arg3[%c0_3, %c0_4], %12 {strides = array<i32>} : memref<8x1xf32, #tpu.memory_space<vmem>>, vector<8x1xf32>,
    return
  }
}

</mosaic_0001>

<bundles_post_ra>
// kernel: tpu_custom_call.1
= control target key start
LH: loop header
LB: loop body
LE: loop exit
PB: predicated region body
PF: predicated region fallthrough
CT: control target
= control target key end

     0   :  { %9 = vsyncpa [#allocation4], 0  ;;  %s101_s0 = inlined_call_operand.vmem [shape: f32[2], index: 0, kind: input, shape index: {}]   ;;  %s102_s1 = inlined_call_operand.<no memory space> [shape: f32[1], index: 1, kind: input, shape index: {}]   ;;  %s103_s2 = inlined_call_operand.vmem [shape: f32[8,2], index: 2, kind: input, shape index: {}]   ;;  %s104_s3 = inlined_call_operand.vmem [shape: f32[8,1], index: 3, kind: output, shape index: {}]  }
   0x1   :  { %s16_s14 = sshll.u32 %s101_s0, 4  ;;  %s17_s14 = int_to_ptr.vmem [resolvable:$true] %s16_s14 }
   0x2   :  { %s53_s15 = scalar_lea.vmem %s17_s14, 16  ;;  %p58_p1 = scmp.lt.s32.totalorder %s17_s14, %s17_s14 }
   0x3   :  { %p54_p0 = scmp.ne.s32.totalorder %s17_s14, %s53_s15  ;;  %p59_p2 = scmp.lt.s32.totalorder %s53_s15, %s53_s15 }
   0x5   :  { %p60_p3 = por %p59_p2, %p58_p1 }
   0x7   :  { %p61_p4 = pnand %p60_p3, %p54_p0 }
   0x9   :  { %64 = shalt.err (!%p61_p4)
}
   0xa   :  { %s67_s16 = smov [#allocation3]  }
   0xb   :  { %19 = dma.vmem_to_smem %s17_s14, 16, %s67_s16, [#allocation4]  }
   0xc   :  { %65 = dma.done.wait [#allocation4], 16  }
   0xd   :  { %66 = vsyncadd [#allocation4], 4294967280 }
   0xe   :  { %27 = sfence }
   0xf   :  { %s50_s17 = sld [smem:[#allocation3 + $0x1]]  ;;  %v28_v0 = vld [vmem:[%s103_s2] sm:$0xff]  ;;  %s68_s0 = smov 127   ;;  %v41_v6 = vstv %s102_s1  ;;  %vm43_vm0 = vcmask 7168  }
  0x10   :  { %s29_s20 = sld [smem:[#allocation3]] }
  0x15   :  { %v33_v1 = vstv %s50_s17 }
  0x16   :  { %v34_v2 = vmul.f32 %v33_v1, %v28_v0  ;;  %v30_v3 = vstv %s29_s20 }
  0x17   :  { %v31_v4 = vmul.f32 %v30_v3, %v28_v0 }
  0x18   :  { %36 = vrot.lane.b32.xlu0 %v34_v2, %s68_s0 }
  0x8a   :  { %v37_v5 = vpop.permute.xlu0 %36 }
  0x8b   :  { %v39_v7 = vadd.f32 %v37_v5, %v31_v4 }
  0x8d   :  { %v42_v8 = vadd.f32 %v41_v6, %v39_v7 }
  0x8f   :  { %44 = vst.msk [vmem:[%s104_s3] sm:$0xff] %vm43_vm0, %v42_v8 }
  0x90   :  { %49 = vsyncpa [#allocation4], 1 }

</bundles_post_ra>
